<compile_context>
chip_gen: v5e
topology: v5e:2x2
jax: 0.10.0
libtpu: 0.0.40
codegen_flags: <defaults>
</compile_context>

<pallas_src>
from functools import partial

import jax
import jax.numpy as jnp
from jax.experimental import pallas as pl
from jax.experimental.pallas import tpu as pltpu


def _plastic_synapse_kernel(heb_ref, x_ref, w_ref, a_ref, out_ref, wnew_ref, acc_ref):
    # heb_ref  : SMEM (1,)              scalar hebbian mean (same for every tile)
    # x_ref    : VMEM (B, tile_k)       activations (resident / k-tiled)
    # w_ref    : VMEM (tile_o, tile_k)  weight tile
    # a_ref    : VMEM (tile_o, tile_k)  alpha tile
    # out_ref  : VMEM (B, tile_o)       linear output tile (resident across k)
    # wnew_ref : VMEM (tile_o, tile_k)  updated-weight tile (aliases weight in HBM)
    # acc_ref  : VMEM (B, tile_o) f32   output accumulator across the k axis
    k = pl.program_id(1)
    h = heb_ref[0]

    # Plastic update, written straight into the output tile. Feeding the MXU
    # from the output ref (instead of a separate w_new value) lets Mosaic reuse
    # that buffer rather than keeping an extra (tile_o, tile_k) VMEM temporary
    # live across the matmul.
    wnew_ref[...] = (w_ref[...] + a_ref[...] * h).astype(wnew_ref.dtype)

    @pl.when(k == 0)
    def _():
        acc_ref[...] = jnp.zeros_like(acc_ref)

    # F.linear(x, w_new) = x @ w_new.T: contract the last dims of both operands
    # so the MXU consumes the weight tile in native layout (no explicit transpose).
    acc_ref[...] += jax.lax.dot_general(
        x_ref[...], wnew_ref[...],
        dimension_numbers=(((1,), (1,)), ((), ())),
        preferred_element_type=jnp.float32,
    )

    @pl.when(k == pl.num_programs(1) - 1)
    def _():
        out_ref[...] = acc_ref[...].astype(out_ref.dtype)


def _vmem_capacity_bytes():
    try:
        return int(pltpu.get_tpu_info().vmem_capacity_bytes)
    except Exception:
        return 64 * 1024 * 1024  # v7x per-TC capacity: safe lower bound everywhere


def _pick_tiles(batch, f_in, f_out, itemsize):
    """Generation-aware tile selection for the (F_out, F_in) weight-sized streams."""
    budget = int(_vmem_capacity_bytes() * 0.65)  # ~44 MiB/TC on v7x, ~83 MiB on v5e/v6e

    def fits(to, tk, n_k):
        w_bytes = 7 * to * tk * itemsize          # 2x w-in + 2x alpha-in + 2x w_new-out + temp
        x_bytes = (1 if n_k == 1 else 2) * batch * tk * 4
        o_bytes = 2 * batch * to * 4 + batch * to * 4   # out double-buffer + f32 accumulator
        return w_bytes + x_bytes + o_bytes <= budget

    # Output-feature tile candidates: lane-dense (128-multiples), largest first,
    # preferring divisors of F_out so there is no ragged / masked last tile.
    if f_out % 128 == 0:
        cands = [t for t in (2048, 1024, 512, 256, 128) if t <= f_out]
        divs = [t for t in cands if f_out % t == 0]
        cands = divs if divs else cands
    else:
        cands = [f_out]  # out's last dim must be a 128-multiple or the full dim

    # 1) Full-F_in rows (single reduction step) if they fit the VMEM budget.
    fitting = [t for t in cands if fits(t, f_in, 1)]
    if fitting:
        # Prefer >= 2 output tiles (keeps the DMA pipeline busy and both v7x
        # TensorCores fed); among those, the largest tile amortizes the ~0.35us
        # per-step overhead best.
        multi = [t for t in fitting if -(-f_out // t) >= 2]
        return (multi[0] if multi else fitting[0]), f_in

    # 2) Very wide layers: also tile the contraction (F_in) axis.
    tile_o = cands[-1]
    if f_in % 128 == 0:
        for tk in (8192, 4096, 2048, 1024, 512, 256, 128):
            if tk <= f_in and f_in % tk == 0 and fits(tile_o, tk, f_in // tk):
                return tile_o, tk
        return tile_o, 128
    return tile_o, f_in  # cannot split a non-128-multiple F_in


@partial(jax.jit, static_argnames=("tile_o", "tile_k"), donate_argnums=(2,))
def plastic_synapse_forward(x, pre_synaptic_activity, weight, alpha,
                            tile_o=None, tile_k=None):
    """Returns (output, updated_weight) — functional equivalent of the module."""
    B, F_in = x.shape
    F_out, F_in_w = weight.shape
    assert F_in_w == F_in
    assert pre_synaptic_activity.shape == (B, F_in)
    w_isz = jnp.dtype(weight.dtype).itemsize
    x_isz = jnp.dtype(x.dtype).itemsize

    auto_o, auto_k = _pick_tiles(B, F_in, F_out, w_isz)
    tile_o = min(F_out, auto_o if tile_o is None else tile_o)
    tile_k = min(F_in, auto_k if tile_k is None else tile_k)
    assert tile_o == F_out or tile_o % 128 == 0, "tile_o must be a 128-multiple or F_out"
    assert tile_k == F_in or (tile_k % 128 == 0 and F_in % tile_k == 0), \
        "tile_k must be F_in or a 128-multiple dividing F_in"

    grid_o = -(-F_out // tile_o)
    grid_k = -(-F_in // tile_k)

    # Hebbian scalar hoisted out of the tile loop (tiny B*F_in reduction):
    #   mean_b dot(pre[b], x[b]) == sum(pre * x) / B   (f32 accumulation)
    hebbian = (
        jnp.sum(pre_synaptic_activity.astype(jnp.float32) * x.astype(jnp.float32))
        / jnp.float32(B)
    ).reshape((1,))

    out_shapes = (
        jax.ShapeDtypeStruct((B, F_out), x.dtype),           # linear output
        jax.ShapeDtypeStruct((F_out, F_in), weight.dtype),   # updated weight
    )

    # x is only DMA'd once when its block never changes -> single-buffer it to
    # reclaim one B*F_in buffer of VMEM for larger weight tiles.
    if grid_k == 1:
        x_spec = pl.BlockSpec((B, tile_k), lambda i, k: (0, k),
                              pipeline_mode=pl.Buffered(1))
    else:
        x_spec = pl.BlockSpec((B, tile_k), lambda i, k: (0, k))

    grid_spec = pltpu.PrefetchScalarGridSpec(
        num_scalar_prefetch=0,
        grid=(grid_o, grid_k),
        in_specs=[
            pl.BlockSpec(memory_space=pltpu.MemorySpace.SMEM),    # hebbian scalar
            x_spec,                                               # x
            pl.BlockSpec((tile_o, tile_k), lambda i, k: (i, k)),  # weight tile
            pl.BlockSpec((tile_o, tile_k), lambda i, k: (i, k)),  # alpha tile
        ],
        out_specs=[
            pl.BlockSpec((B, tile_o), lambda i, k: (0, i)),       # output tile
            pl.BlockSpec((tile_o, tile_k), lambda i, k: (i, k)),  # updated weight tile
        ],
        scratch_shapes=[pltpu.VMEM((B, tile_o), jnp.float32)],    # k-axis accumulator
    )

    cost = pl.CostEstimate(
        flops=2 * B * F_out * F_in + 2 * F_out * F_in,
        transcendentals=0,
        bytes_accessed=(3 * F_out * F_in * w_isz      # read w, read alpha, write w_new
                        + B * F_in * x_isz            # read x
                        + B * F_out * x_isz),         # write out
    )

    return pl.pallas_call(
        _plastic_synapse_kernel,
        out_shape=out_shapes,
        grid_spec=grid_spec,
        # weight input (index 2: after hebbian, x) aliases the updated-weight
        # output (index 1). Combined with donate_argnums=(2,) on the jit this is
        # a true in-place HBM update (no defensive weight copy, no extra buffer).
        input_output_aliases={2: 1},
        cost_estimate=cost,
        compiler_params=pltpu.CompilerParams(
            dimension_semantics=("parallel", "arbitrary"),  # F_out tiles across v7x 2 TCs
            vmem_limit_bytes=int(_vmem_capacity_bytes() * 0.72),
        ),
    )(hebbian, x, weight, alpha)


def plastic_synapse_reference(x, pre, weight, alpha):
    """Pure-JAX reference mirroring the PyTorch module."""
    h = jnp.mean(jnp.sum(pre * x, axis=1))      # bmm((B,1,F),(B,F,1)).mean(0)
    w_new = weight + alpha * h
    return x @ w_new.T, w_new


if __name__ == "__main__":
    # Make the XLA reference matmul full precision so it matches the in-kernel
    # f32 MXU matmul to tight tolerances.
    jax.config.update("jax_default_matmul_precision", "highest")

    B, F_IN, F_OUT = 8, 256, 256

    key = jax.random.PRNGKey(0)
    k_x, k_pre, k_w, k_a = jax.random.split(key, 4)

    x = jax.random.normal(k_x, (B, F_IN), dtype=jnp.float32)
    pre_act = jax.random.normal(k_pre, (B, F_IN), dtype=jnp.float32)
    weight = jax.random.normal(k_w, (F_OUT, F_IN), dtype=jnp.float32) * 0.01
    alpha = jax.random.normal(k_a, (F_OUT, F_IN), dtype=jnp.float32) * 0.01

    # Reference first (the kernel donates / overwrites its weight argument).
    out_exp, w_exp = plastic_synapse_reference(x, pre_act, weight, alpha)
    out_exp, w_exp = jax.block_until_ready((out_exp, w_exp))

    # Call 1: auto tile selection (full-F_in rows, >= 2 output tiles, Buffered(1) x).
    w1 = jnp.copy(weight)   # donated to the kernel (true in-place update)
    out1, wn1 = plastic_synapse_forward(x, pre_act, w1, alpha)
    out1, wn1 = jax.block_until_ready((out1, wn1))

    # Call 2: force contraction-axis (F_in) tiling to exercise the accumulator path.
    w2 = jnp.copy(weight)   # donated to the kernel (true in-place update)
    out2, wn2 = plastic_synapse_forward(x, pre_act, w2, alpha, tile_o=128, tile_k=128)
    out2, wn2 = jax.block_until_ready((out2, wn2))

    assert jnp.allclose(out1, out_exp, atol=1e-3, rtol=1e-3), "output mismatch (auto tiles)"
    assert jnp.allclose(wn1, w_exp, atol=1e-5, rtol=1e-5), "weight mismatch (auto tiles)"
    assert jnp.allclose(out2, out_exp, atol=1e-3, rtol=1e-3), "output mismatch (k-tiled)"
    assert jnp.allclose(wn2, w_exp, atol=1e-5, rtol=1e-5), "weight mismatch (k-tiled)"

    print("KERNEL_OK")
</pallas_src>

<mosaic_0001>
module attributes {stable_mosaic.version = 11 : i64} {
  func.func @_plastic_synapse_kernel(%arg0: i32, %arg1: i32, %arg2: memref<1xf32, #tpu.memory_space<smem>>, %arg3: memref<8x256xf32, #tpu.memory_space<vmem>>, %arg4: memref<128x256xf32, #tpu.memory_space<vmem>>, %arg5: memref<128x256xf32, #tpu.memory_space<vmem>>, %arg6: memref<8x128xf32, #tpu.memory_space<vmem>>, %arg7: memref<128x256xf32, #tpu.memory_space<vmem>>, %arg8: memref<8x128xf32, #tpu.memory_space<vmem>>) attributes {dimension_semantics = [#tpu.dimension_semantics<parallel>, #tpu.dimension_semantics<arbitrary>], iteration_bounds = array<i64: 2, 1>, scalar_prefetch = 0 : i64, scratch_operands = 1 : i64, tpu.core_type = #tpu.core_type<tc>, window_params = [{transform_indices = @transform_0, window_bounds = array<i64: 1>}, {pipeline_mode = #tpu.pipeline_mode<synchronous>, transform_indices = @transform_1, window_bounds = array<i64: 8, 256>}, {transform_indices = @transform_2, window_bounds = array<i64: 128, 256>}, {transform_indices = @transform_3, window_bounds = array<i64: 128, 256>}, {transform_indices = @transform_4, window_bounds = array<i64: 8, 128>}, {transform_indices = @transform_5, window_bounds = array<i64: 128, 256>}]} {
    %c0 = arith.constant 0 : index
    %0 = memref.load %arg2[%c0] : memref<1xf32, #tpu.memory_space<smem>>
    %c0_0 = arith.constant 0 : index
    %c0_1 = arith.constant 0 : index
    %1 = vector.load %arg4[%c0_0, %c0_1] : memref<128x256xf32, #tpu.memory_space<vmem>>, vector<128x256xf32>
    %c0_2 = arith.constant 0 : index
    %c0_3 = arith.constant 0 : index
    %2 = vector.load %arg5[%c0_2, %c0_3] : memref<128x256xf32, #tpu.memory_space<vmem>>, vector<128x256xf32>
    %3 = vector.broadcast %0 : f32 to vector<128x256xf32>
    %4 = arith.mulf %2, %3 : vector<128x256xf32>
    %5 = arith.addf %1, %4 : vector<128x256xf32>
    %c0_4 = arith.constant 0 : index
    %c0_5 = arith.constant 0 : index
    %6 = vector.load %arg7[%c0_4, %c0_5] : memref<128x256xf32, #tpu.memory_space<vmem>>, vector<128x256xf32>
    tpu.vector_store %arg7[%c0_4, %c0_5], %5 {strides = array<i32>} : memref<128x256xf32, #tpu.memory_space<vmem>>, vector<128x256xf32>,
    %c0_i32 = arith.constant 0 : i32
    %7 = arith.cmpi eq, %arg1, %c0_i32 : i32
    %8 = arith.extui %7 : i1 to i32
    %c0_i32_6 = arith.constant 0 : i32
    %9 = arith.cmpi ne, %8, %c0_i32_6 : i32
    scf.if %9 {
      %cst_17 = arith.constant 0.000000e+00 : f32
      %19 = vector.broadcast %cst_17 : f32 to vector<8x128xf32>
      %c0_18 = arith.constant 0 : index
      %c0_19 = arith.constant 0 : index
      %20 = vector.load %arg8[%c0_18, %c0_19] : memref<8x128xf32, #tpu.memory_space<vmem>>, vector<8x128xf32>
      tpu.vector_store %arg8[%c0_18, %c0_19], %19 {strides = array<i32>} : memref<8x128xf32, #tpu.memory_space<vmem>>, vector<8x128xf32>,
    } else {
    }
    %c0_7 = arith.constant 0 : index
    %c0_8 = arith.constant 0 : index
    %10 = vector.load %arg8[%c0_7, %c0_8] : memref<8x128xf32, #tpu.memory_space<vmem>>, vector<8x128xf32>
    %c0_9 = arith.constant 0 : index
    %c0_10 = arith.constant 0 : index
    %11 = vector.load %arg3[%c0_9, %c0_10] : memref<8x256xf32, #tpu.memory_space<vmem>>, vector<8x256xf32>
    %c0_11 = arith.constant 0 : index
    %c0_12 = arith.constant 0 : index
    %12 = vector.load %arg7[%c0_11, %c0_12] : memref<128x256xf32, #tpu.memory_space<vmem>>, vector<128x256xf32>
    %cst = arith.constant dense<0.000000e+00> : vector<8x128xf32>
    %13 = tpu.matmul %11, %12, %cst {dimension_numbers = #tpu.dot_dimension_numbers<[1], [1], [0], [0], [0, 0, 1, 0], [], []>, precision = #tpu.contract_precision<fp32>} : vector<8x256xf32>, vector<128x256xf32>, vector<8x128xf32> -> vector<8x128xf32>
    %14 = arith.addf %10, %13 : vector<8x128xf32>
    %c0_13 = arith.constant 0 : index
    %c0_14 = arith.constant 0 : index
    %15 = vector.load %arg8[%c0_13, %c0_14] : memref<8x128xf32, #tpu.memory_space<vmem>>, vector<8x128xf32>
    tpu.vector_store %arg8[%c0_13, %c0_14], %14 {strides = array<i32>} : memref<8x128xf32, #tpu.memory_space<vmem>>, vector<8x128xf32>,
    %c0_i32_15 = arith.constant 0 : i32
    %16 = arith.cmpi eq, %arg1, %c0_i32_15 : i32
    %17 = arith.extui %16 : i1 to i32
    %c0_i32_16 = arith.constant 0 : i32
    %18 = arith.cmpi ne, %17, %c0_i32_16 : i32
    scf.if %18 {
      %c0_17 = arith.constant 0 : index
      %c0_18 = arith.constant 0 : index
      %19 = vector.load %arg8[%c0_17, %c0_18] : memref<8x128xf32, #tpu.memory_space<vmem>>, vector<8x128xf32>
      %c0_19 = arith.constant 0 : index
      %c0_20 = arith.constant 0 : index
      %20 = vector.load %arg6[%c0_19, %c0_20] : memref<8x128xf32, #tpu.memory_space<vmem>>, vector<8x128xf32>
      tpu.vector_store %arg6[%c0_19, %c0_20], %19 {strides = array<i32>} : memref<8x128xf32, #tpu.memory_space<vmem>>, vector<8x128xf32>,
    } else {
    }
    return
  }
  func.func @transform_0(%arg0: i32, %arg1: i32) -> i32 {
    %c0_i32 = arith.constant 0 : i32
    %c0_i32_0 = arith.constant 0 : i32
    return %c0_i32 : i32
  }
  func.func @transform_1(%arg0: i32, %arg1: i32) -> (i32, i32) {
    %c0_i32 = arith.constant 0 : i32
    %c0_i32_0 = arith.constant 0 : i32
    return %c0_i32, %arg1 : i32, i32
  }
  func.func @transform_2(%arg0: i32, %arg1: i32) -> (i32, i32) {
    %c0_i32 = arith.constant 0 : i32
    return %arg0, %arg1 : i32, i32
  }
  func.func @transform_3(%arg0: i32, %arg1: i32) -> (i32, i32) {
    %c0_i32 = arith.constant 0 : i32
    return %arg0, %arg1 : i32, i32
  }
  func.func @transform_4(%arg0: i32, %arg1: i32) -> (i32, i32) {
    %c0_i32 = arith.constant 0 : i32
    %c0_i32_0 = arith.constant 0 : i32
    return %c0_i32, %arg0 : i32, i32
  }
  func.func @transform_5(%arg0: i32, %arg1: i32) -> (i32, i32) {
    %c0_i32 = arith.constant 0 : i32
    return %arg0, %arg1 : i32, i32
  }
}

</mosaic_0001>

<bundles_post_ra>
// kernel: plastic_synapse_forward.1
= control target key start
LH: loop header
LB: loop body
LE: loop exit
PB: predicated region body
PF: predicated region fallthrough
CT: control target
= control target key end

     0   :  { %s2692_s0 = inlined_call_operand.<no memory space> [shape: f32[1], index: 0, kind: input, shape index: {}]   ;;  %s2693_s1 = inlined_call_operand.vmem [shape: f32[8,256], index: 1, kind: input, shape index: {}]   ;;  %s2694_s2 = inlined_call_operand.hbm [shape: f32[256,256], index: 2, kind: input, shape index: {}, may-alias: {2,5}]   ;;  %s2695_s3 = inlined_call_operand.hbm [shape: f32[256,256], index: 3, kind: input, shape index: {}]   ;;  %s2696_s4 = inlined_call_operand.hbm [shape: f32[8,256], index: 4, kind: output, shape index: {0}]   ;;  %s2697_s5 = inlined_call_operand.hbm [shape: f32[256,256], index: 5, kind: output, shape index: {1}, may-alias: {2,5}]  }
   0x1   :  { %2718 = sst [smem:[#allocation17_spill]] %s2694_s2 }
   0x2   :  { %11 = sst [smem:[#allocation3]] %s2692_s0 }
   0x3   :  { %12 = vsyncpa [#allocation5], 0 }
   0x4   :  { %14 = vsyncpa [#allocation5 + $0x1], 0 }
   0x5   :  { %15 = vsyncpa [#allocation8], 0 }
   0x6   :  { %17 = vsyncpa [#allocation8 + $0x1], 0 }
   0x7   :  { %18 = vsyncpa [#allocation6], 0 }
   0x8   :  { %20 = vsyncpa [#allocation6 + $0x1], 0 }
   0x9   :  { %21 = vsyncpa [#allocation11], 0 }
   0xa   :  { %23 = vsyncpa [#allocation11 + $0x1], 0  ;;  %s1766_s20 = smov 0   ;;  %s1768_s21 = smov 0  }
   0xb   :  { %s1770_s22 = smov 0   ;;  %s1772_s23 = smov 0  }
   0xc   :  { %s1774_s24 = smov 0   ;;  %s1776_s25 = smov 0  }
   0xd LB: > { %s1441_s0 = sadd.s32 4294967295, %s1727_s25   ;;  %s1442_s26 = sadd.s32 4294967294, %s1727_s25   ;;  %s1727_s25 = sphi %s1776_s25, %s29_s25   ;;  %s1723_s24 = sphi %s1774_s24, %s2750_s24   ;;  %s1719_s23 = sphi %s1772_s23, %s2749_s23   ;;  %s1715_s22 = sphi %s1770_s22, %s2748_s22   ;;  %s1711_s21 = sphi %s1768_s21, %s2747_s21   ;;  %s1707_s20 = sphi %s1766_s20, %s2746_s20  }
   0xe   : > { %s41_s27 = sadd.s32 1, %s1723_s24  ;;  %s97_s28 = sadd.s32 1, %s1715_s22 }
   0xf   : > { %p43_p0 = scmp.ge.s32.totalorder %s41_s27, 2  ;;  %p104_p1 = scmp.ne.s32.totalorder %s1715_s22, %s1711_s21 }
  0x10   : > { %p105_p2 = scmp.eq.s32.totalorder %s1727_s25, 0  ;;  %p110_p3 = scmp.ne.s32.totalorder %s1711_s21, %s1707_s20 }
  0x11   : > { %s2752_s27 = smov (%p43_p0, %s41_s27), 0  ;;  %p111_p5 = scmp.eq.s32.totalorder %s1441_s0, 0 }
  0x12   : > { %2719 = sst [smem:[#allocation16_spill]] %s2752_s27  ;;  %p1807_p4 = por %p105_p2, %p104_p1 }
  0x13   : > { %s92_s30 = ssub.s32 %s1723_s24, %s2752_s27  ;;  %p162_p6 = scmp.eq.s32.totalorder %s1441_s0, 1 }
  0x14   : > { %p95_p7 = scmp.eq.s32.totalorder %s92_s30, 0  ;;  %p1813_p8 = por %p111_p5, %p110_p3 }
  0x15   : > { %p1817_p9 = por %p162_p6, %p104_p1  ;;  %p168_p10 = scmp.eq.s32.totalorder %s1442_s26, 1 }
  0x16   : > { %s1822_s8 = scalar_select %p95_p7, %s1715_s22, %s97_s28  }
  0x17   : > { %p1824_p11 = por %p168_p10, %p110_p3  ;;  %p1445_p12 = scmp.ge.s32.totalorder %s1727_s25, 2 }
  0x18   : > { %p1495_p13 = scmp.lt.s32.totalorder %s1727_s25, 2  ;;  %s1831_s10 = sand.u32 1, %s1715_s22  }
  0x19   : > { %s1446_s11 = sshll.u32 %s1831_s10, 8  ;;  %s1468_s12 = sshll.u32 %s1723_s24, 8 }
  0x1a   : > { %s2724_s2 = sld [smem:[#allocation17_spill]]  ;;  %s232_s16 = scalar_lea.vmem [#allocation4], %s1446_s11 }
  0x1b   : > { %s243_s17 = sshll.u32 %s232_s16, 4  ;;  %p1840_p0 = pnand %p1495_p13, %p1807_p4  ;;  %s244_s17 = int_to_ptr.vmem [resolvable:$true] %s243_s17 }
  0x1c   : > { %p1454_p1 = scmp.ge.s32.totalorder %s1727_s25, 1  ;;  %s229_s0 = scalar_lea.sflag [#allocation5], %s1831_s10 }
  0x1d   : > { %s1729_s26 = smov 256   ;;  %s1730_s28 = smov 16  }
  0x1e   : > { %p276_p2 = scmp.lt.s32.totalorder %s1727_s25, 3  ;;  %s265_s14 = scalar_lea.hbm %s2695_s3, %s1468_s12 }
  0x1f   : > { %s257_s29 = scalar_lea.vmem [#allocation7], %s1446_s11 }
  0x20   : > { %s240_s15 = scalar_lea.hbm %s2724_s2, %s1468_s12  ;;  %p277_p3 = pnand %p1454_p1, %p276_p2 }
  0x21   : > { %s241_s18 = sshll.u32 %s240_s15, 4  ;;  %s266_s15 = sshll.u32 %s265_s14, 4  ;;  %s242_s18 = int_to_ptr.hbm [resolvable:$true] %s241_s18  ;;  %s267_s15 = int_to_ptr.hbm [resolvable:$true] %s266_s15 }
  0x22   : > { %1484 = dma.hbm_to_vmem [thread:$0]  (!%p1840_p0), %s242_s18, 4096, %s244_s17, %s229_s0, %s1729_s26, %s1729_s26, %s1730_s28  }
  0x23   : > { %s268_s16 = sshll.u32 %s257_s29, 4  ;;  %s254_s2 = scalar_lea.sflag [#allocation8], %s1831_s10  ;;  %s269_s16 = int_to_ptr.vmem [resolvable:$true] %s268_s16 }
  0x24   : > { %1487 = dma.hbm_to_vmem [thread:$0]  (!%p1840_p0), %s267_s15, 4096, %s269_s16, %s254_s2, %s1729_s26, %s1729_s26, %s1730_s28  }
  0x25   : > { %280 = sbr.rel (%p277_p3) target bundleno = 392 (0x188), region = 36  ;;  %s1856_s27 = sand.u32 (!%p277_p3), 1, %s1711_s21  }
  0x26   : > { %s1859_s17 = sshll.u32 (!%p277_p3), %s1856_s27, 8  ;;  %s283_s12 = scalar_lea.sflag (!%p277_p3), [#allocation5], %s1856_s27 }
  0x27   : > { %s1863_s18 = scalar_lea.vmem (!%p277_p3), [#allocation4], %s1859_s17 }
  0x2a   : > { %1690 = dma.done.wait (%p1813_p8), %s283_s12, 4096  }
  0x2b   : > { %1692 = vsyncadd (%p1813_p8), %s283_s12, 4294963200  ;;  %s293_s2 = scalar_lea.sflag [#allocation8], %s1856_s27  ;;  %s1871_s10 = scalar_lea.vmem [#allocation7], %s1859_s17 }
  0x2c   : > { %1694 = dma.done.wait (%p1813_p8), %s293_s2, 4096  }
  0x2d   : > { %1696 = vsyncadd (%p1813_p8), %s293_s2, 4294963200  ;;  %s351_s11 = sld [smem:[#allocation3]]  ;;  %v382_v0 = vld [vmem:[%s1863_s18 + $0xf0] sm:$0xff]  ;;  %v380_v3 = vld [vmem:[%s1863_s18 + $0xe0] sm:$0xff]  ;;  %s1898_s6 = scalar_lea.vmem [#allocation10], %s1859_s17 }
  0x2e   : > { %v414_v1 = vld [vmem:[%s1871_s10 + $0xf0] sm:$0xff]  ;;  %v412_v5 = vld [vmem:[%s1871_s10 + $0xe0] sm:$0xff]  ;;  %s1472_s30 = sshll.u32 %s1719_s23, 8  ;;  %s1277_s29 = sshll.u32 %s1898_s6, 4  ;;  %s1278_s29 = int_to_ptr.vmem [resolvable:$true] %s1277_s29 }
  0x2f   : > { %v378_v6 = vld [vmem:[%s1863_s18 + $0xd0] sm:$0xff]  ;;  %v376_v10 = vld [vmem:[%s1863_s18 + $0xc0] sm:$0xff]  ;;  %s1276_s15 = scalar_lea.hbm %s2697_s5, %s1472_s30  ;;  %s1248_s17 = scalar_lea.sflag [#allocation11], %s1856_s27 }
  0x30   : > { %v410_v7 = vld [vmem:[%s1871_s10 + $0xd0] sm:$0xff]  ;;  %v408_v11 = vld [vmem:[%s1871_s10 + $0xc0] sm:$0xff]  ;;  %s1279_s16 = sshll.u32 %s1276_s15, 4  ;;  %s1280_s16 = int_to_ptr.hbm [resolvable:$true] %s1279_s16 }
  0x31   : > { %v374_v14 = vld [vmem:[%s1863_s18 + $0xb0] sm:$0xff]  ;;  %v404_v16 = vld [vmem:[%s1871_s10 + $0xa0] sm:$0xff]  ;;  %s1623_s12 = sshra.s32 %s1280_s16, 4  ;;  %s1624_s12 = int_to_ptr.hbm [resolvable:$true] %s1623_s12 }
  0x32   : > { %v406_v15 = vld [vmem:[%s1871_s10 + $0xb0] sm:$0xff]  ;;  %v372_v24 = vld [vmem:[%s1863_s18 + $0xa0] sm:$0xff]  ;;  %p1630_p7 = scmp.lt.s32.totalorder %s1624_s12, %s2697_s5 }
  0x33   : > { %v1879_v2 = vstv %s351_s11  ;;  %v402_v21 = vld [vmem:[%s1871_s10 + $0x90] sm:$0xff]  ;;  %v400_v30 = vld [vmem:[%s1871_s10 + $0x80] sm:$0xff]  ;;  %s1629_s11 = scalar_lea.hbm %s2697_s5, 512 }
  0x34   : > { %v447_v4 = vmul.f32 %v1879_v2, %v414_v1  ;;  %v445_v8 = vmul.f32 %v1879_v2, %v412_v5  ;;  %v443_v9 = vmul.f32 %v1879_v2, %v410_v7  ;;  %v441_v13 = vmul.f32 %v1879_v2, %v408_v11  ;;  %v370_v29 = vld [vmem:[%s1863_s18 + $0x90] sm:$0xff]  ;;  %v368_v36 = vld [vmem:[%s1863_s18 + $0x80] sm:$0xff] }
  0x35   : > { %v439_v19 = vmul.f32 %v1879_v2, %v406_v15  ;;  %v437_v20 = vmul.f32 %v1879_v2, %v404_v16  ;;  %v435_v25 = vmul.f32 %v1879_v2, %v402_v21  ;;  %v433_v39 = vmul.f32 %v1879_v2, %v400_v30  ;;  %v398_v47 = vld [vmem:[%s1871_s10 + $0x70] sm:$0xff]  ;;  %v396_v49 = vld [vmem:[%s1871_s10 + $0x60] sm:$0xff] }
  0x36   : > { %v479_v12 = vadd.f32 %v447_v4, %v382_v0  ;;  %v477_v17 = vadd.f32 %v445_v8, %v380_v3  ;;  %v475_v18 = vadd.f32 %v443_v9, %v378_v6  ;;  %v473_v23 = vadd.f32 %v441_v13, %v376_v10  ;;  %v394_v50 = vld [vmem:[%s1871_s10 + $0x50] sm:$0xff]  ;;  %v392_v54 = vld [vmem:[%s1871_s10 + $0x40] sm:$0xff] }
  0x37   : > { %v471_v28 = vadd.f32 %v439_v19, %v374_v14  ;;  %v469_v35 = vadd.f32 %v437_v20, %v372_v24  ;;  %v467_v38 = vadd.f32 %v435_v25, %v370_v29  ;;  %v1946_v45 = vadd.f32 %v433_v39, %v368_v36  ;;  %v366_v53 = vld [vmem:[%s1863_s18 + $0x70] sm:$0xff]  ;;  %v364_v59 = vld [vmem:[%s1863_s18 + $0x60] sm:$0xff] }
  0x38   : > { %511 = vst [vmem:[%s1898_s6 + $0xf0] sm:$0xff] %v479_v12  ;;  %v1901_v22 = vand.u32 4294901760, %v479_v12  ;;  %v1906_v26 = vand.u32 4294901760, %v477_v17  ;;  %v1908_v27 = vand.u32 4294901760, %v475_v18  ;;  %v1918_v32 = vand.u32 4294901760, %v473_v23  ;;  %v362_v61 = vld [vmem:[%s1863_s18 + $0x50] sm:$0xff] }
  0x39   : > { %509 = vst [vmem:[%s1898_s6 + $0xe0] sm:$0xff] %v477_v17  ;;  %v1933_v41 = vand.u32 4294901760, %v471_v28  ;;  %v1957_v51 = vand.u32 4294901760, %v469_v35  ;;  %v431_v58 = vmul.f32 %v1879_v2, %v398_v47  ;;  %v429_v60 = vmul.f32 %v1879_v2, %v396_v49  ;;  %v390_v63 = vld [vmem:[%s1871_s10 + $0x30] sm:$0xff]  ;;  %v360_v1 = vld [vmem:[%s1863_s18 + $0x40] sm:$0xff]  ;;  %v383_v49 = vld [vmem:[%s1863_s18 + $0xf8] sm:$0xff] }
  0x3a   : > { %554 = vmatpush.xpose.msra.mxu0 %v1901_v22  ;;  %v1914_v31 = vsub.f32 %v479_v12, %v1901_v22  ;;  %750 = vmatpush.xpose.msra.mxu3 %v1901_v22  ;;  %507 = vst [vmem:[%s1898_s6 + $0xd0] sm:$0xff] %v475_v18  ;;  %v1921_v33 = vsub.f32 %v477_v17, %v1906_v26  ;;  %v1981_v4 = vand.u32 4294901760, %v467_v38  ;;  %v358_v7 = vld [vmem:[%s1863_s18 + $0x30] sm:$0xff]  ;;  %v388_v14 = vld [vmem:[%s1871_s10 + $0x20] sm:$0xff]  ;;  %v2012_v17 = vand.u32 4294901760, %v1946_v45 }
  0x3b   : > { %505 = vst [vmem:[%s1898_s6 + $0xc0] sm:$0xff] %v473_v23  ;;  %v1925_v34 = vsub.f32 %v475_v18, %v1908_v27  ;;  %v1936_v42 = vsub.f32 %v473_v23, %v1918_v32  ;;  %v1960_v52 = vsub.f32 %v471_v28, %v1933_v41  ;;  %v427_v62 = vmul.f32 %v1879_v2, %v394_v50  ;;  %v356_v20 = vld [vmem:[%s1863_s18 + $0x20] sm:$0xff]  ;;  %v386_v25 = vld [vmem:[%s1871_s10 + $0x10] sm:$0xff] }
  0x3c   : > { %697 = vmatpush.xpose.msra.mxu2 %v1914_v31  ;;  %v596_v37 = vand.u32 4294901760, %v1914_v31  ;;  %503 = vst [vmem:[%s1898_s6 + $0xb0] sm:$0xff] %v471_v28  ;;  %v602_v40 = vand.u32 4294901760, %v1921_v33  ;;  %v1977_v0 = vadd.f32 %v431_v58, %v366_v53  ;;  %v425_v3 = vmul.f32 %v1879_v2, %v392_v54  ;;  %v384_v47 = vld [vmem:[%s1871_s10] sm:$0xff] }
  0x3d   : > { %501 = vst [vmem:[%s1898_s6 + $0xa0] sm:$0xff] %v469_v35  ;;  %v608_v44 = vand.u32 4294901760, %v1925_v34  ;;  %v614_v57 = vand.u32 4294901760, %v1936_v42  ;;  %v1984_v5 = vsub.f32 %v469_v35, %v1957_v51  ;;  %v1986_v6 = vadd.f32 %v429_v60, %v364_v59  ;;  %v354_v35 = vld [vmem:[%s1863_s18 + $0x10] sm:$0xff]  ;;  %v352_v54 = vld [vmem:[%s1863_s18] sm:$0xff] }
  0x3e   : > { %556 = vmatpush.xpose.msra.mxu0 %v1906_v26  ;;  %v597_v43 = vsub.f32 %v1914_v31, %v596_v37  ;;  %752 = vmatpush.xpose.msra.mxu3 %v1906_v26  ;;  %499 = vst [vmem:[%s1898_s6 + $0x90] sm:$0xff] %v467_v38  ;;  %v603_v46 = vsub.f32 %v1921_v33, %v602_v40  ;;  %v2710_v11 = vand.u32 4294901760, %v1960_v52 }
  0x3f   : > { %497 = vst [vmem:[%s1898_s6 + $0x80] sm:$0xff] %v1946_v45  ;;  %v609_v56 = vsub.f32 %v1925_v34, %v608_v44  ;;  %v423_v8 = vmul.f32 %v1879_v2, %v390_v63  ;;  %v615_v10 = vsub.f32 %v1936_v42, %v614_v57  ;;  %v1997_v12 = vadd.f32 %v427_v62, %v362_v61  ;;  %v413_v61 = vld [vmem:[%s1871_s10 + $0xe8] sm:$0xff] }
  0x40   : > { %v598_v48 = vand.u32 4294901760, %v597_v43  ;;  %700 = vmatpush.xpose.msra.mxu2 %v1921_v33  ;;  %v604_v55 = vand.u32 4294901760, %v603_v46  ;;  %495 = vst [vmem:[%s1898_s6 + $0x70] sm:$0xff] %v1977_v0  ;;  %v2002_v13 = vadd.f32 %v425_v3, %v360_v1  ;;  %v421_v16 = vmul.f32 %v1879_v2, %v388_v14  ;;  %v415_v46 = vld [vmem:[%s1871_s10 + $0xf8] sm:$0xff]  ;;  %v381_v63 = vld [vmem:[%s1863_s18 + $0xe8] sm:$0xff] }
  0x41   : > { %v610_v9 = vand.u32 4294901760, %v609_v56  ;;  %493 = vst [vmem:[%s1898_s6 + $0x60] sm:$0xff] %v1986_v6  ;;  %v2008_v15 = vadd.f32 %v423_v8, %v358_v7  ;;  %v2709_v18 = vand.u32 4294901760, %v1984_v5  ;;  %v2016_v19 = vsub.f32 %v467_v38, %v1981_v4 }
  0x42   : > { %558 = vmatpush.xpose.msra.mxu0 %v1908_v27  ;;  %599 = vmatpush.xpose.msra.mxu1 %v598_v48  ;;  %491 = vst [vmem:[%s1898_s6 + $0x50] sm:$0xff] %v1997_v12  ;;  %v616_v21 = vand.u32 4294901760, %v615_v10  ;;  %v621_v23 = vsub.f32 %v1960_v52, %v2710_v11  ;;  %v2027_v24 = vadd.f32 %v421_v16, %v356_v20  ;;  %v2045_v38 = vand.u32 4294901760, %v1977_v0  ;;  %v411_v10 = vld [vmem:[%s1871_s10 + $0xd8] sm:$0xff] }
  0x43   : > { %754 = vmatpush.xpose.msra.mxu3 %v1908_v27  ;;  %489 = vst [vmem:[%s1898_s6 + $0x40] sm:$0xff] %v2002_v13  ;;  %v419_v28 = vmul.f32 %v1879_v2, %v386_v25  ;;  %v627_v29 = vsub.f32 %v1984_v5, %v2709_v18  ;;  %v2040_v30 = vsub.f32 %v1946_v45, %v2012_v17  ;;  %v2707_v39 = vand.u32 4294901760, %v2016_v19  ;;  %v379_v16 = vld [vmem:[%s1863_s18 + $0xd8] sm:$0xff]  ;;  %v365_v18 = vld [vmem:[%s1863_s18 + $0x68] sm:$0xff] }
  0x44   : > { %703 = vmatpush.xpose.msra.mxu2 %v1925_v34  ;;  %487 = vst [vmem:[%s1898_s6 + $0x30] sm:$0xff] %v2008_v15  ;;  %v622_v36 = vand.u32 4294901760, %v621_v23  ;;  %v448_v45 = vmul.f32 %v1879_v2, %v415_v46  ;;  %v417_v48 = vmul.f32 %v1879_v2, %v384_v47  ;;  %v2068_v58 = vand.u32 4294901760, %v1986_v6  ;;  %v359_v34 = vld [vmem:[%s1863_s18 + $0x38] sm:$0xff] }
  0x45   : > { %485 = vst [vmem:[%s1898_s6 + $0x20] sm:$0xff] %v2027_v24  ;;  %v2048_v43 = vadd.f32 %v419_v28, %v354_v35  ;;  %v628_v50 = vand.u32 4294901760, %v627_v29  ;;  %v2705_v53 = vand.u32 4294901760, %v2040_v30  ;;  %v633_v56 = vsub.f32 %v2016_v19, %v2707_v39  ;;  %v409_v29 = vld [vmem:[%s1871_s10 + $0xc8] sm:$0xff] }
  0x46   : > { %560 = vmatpush.xpose.msra.mxu0 %v1918_v32  ;;  %605 = vmatpush.xpose.msra.mxu1 %v604_v55  ;;  %v2061_v55 = vadd.f32 %v448_v45, %v383_v49  ;;  %v2072_v59 = vsub.f32 %v1977_v0, %v2045_v38  ;;  %v2074_v60 = vadd.f32 %v417_v48, %v352_v54  ;;  %v2092_v7 = vand.u32 4294901760, %v1997_v12 }
  0x47   : > { %756 = vmatpush.xpose.msra.mxu3 %v1918_v32  ;;  %483 = vst [vmem:[%s1898_s6 + $0x10] sm:$0xff] %v2048_v43  ;;  %v446_v62 = vmul.f32 %v1879_v2, %v413_v61  ;;  %v639_v0 = vsub.f32 %v2040_v30, %v2705_v53  ;;  %v634_v3 = vand.u32 4294901760, %v633_v56  ;;  %v444_v14 = vmul.f32 %v1879_v2, %v411_v10  ;;  %v375_v56 = vld [vmem:[%s1863_s18 + $0xb8] sm:$0xff]  ;;  %v405_v10 = vld [vmem:[%s1871_s10 + $0xa8] sm:$0xff] }
  0x48   : > { %706 = vmatpush.xpose.msra.mxu2 %v1936_v42  ;;  %512 = vst [vmem:[%s1898_s6 + $0xf8] sm:$0xff] %v2061_v55  ;;  %v2704_v8 = vand.u32 4294901760, %v2072_v59  ;;  %v2113_v23 = vand.u32 4294901760, %v2002_v13  ;;  %v2118_v28 = vsub.f32 %v1997_v12, %v2092_v7  ;;  %v442_v35 = vmul.f32 %v1879_v2, %v409_v29 }
  0x49   : > { %481 = vst [vmem:[%s1898_s6] sm:$0xff] %v2074_v60  ;;  %v2088_v1 = vadd.f32 %v446_v62, %v381_v63  ;;  %v640_v20 = vand.u32 4294901760, %v639_v0  ;;  %v2128_v46 = vand.u32 4294901760, %v2008_v15  ;;  %v2159_v0 = vand.u32 4294901760, %v2027_v24 }
  0x4a   : > { %562 = vmatpush.xpose.msra.mxu0 %v1933_v41  ;;  %611 = vmatpush.xpose.msra.mxu1 %v610_v9  ;;  %v2097_v9 = vsub.f32 %v1986_v6, %v2068_v58  ;;  %v645_v6 = vsub.f32 %v2072_v59, %v2704_v8  ;;  %v2701_v48 = vand.u32 4294901760, %v2118_v28  ;;  %v2139_v49 = vsub.f32 %v2002_v13, %v2113_v23 }
  0x4b   : > { %758 = vmatpush.xpose.msra.mxu3 %v1933_v41  ;;  %510 = vst [vmem:[%s1898_s6 + $0xe8] sm:$0xff] %v2088_v1  ;;  %v2150_v61 = vsub.f32 %v2008_v15, %v2128_v46  ;;  %v438_v15 = vmul.f32 %v1879_v2, %v405_v10 }
  0x4c   : > { %709 = vmatpush.xpose.msra.mxu2 %v1960_v52  ;;  %v2702_v25 = vand.u32 4294901760, %v2097_v9  ;;  %v646_v12 = vand.u32 4294901760, %v645_v6  ;;  %v657_v63 = vsub.f32 %v2118_v28, %v2701_v48 }
  0x4e   : > { %564 = vmatpush.xpose.msra.mxu0 %v1957_v51  ;;  %617 = vmatpush.xpose.msra.mxu1 %v616_v21  ;;  %v2106_v21 = vadd.f32 %v444_v14, %v379_v16  ;;  %v651_v45 = vsub.f32 %v2097_v9, %v2702_v25  ;;  %v2169_v14 = vand.u32 4294901760, %v2061_v55  ;;  %v373_v16 = vld [vmem:[%s1863_s18 + $0xa8] sm:$0xff]  ;;  %v658_v29 = vand.u32 4294901760, %v657_v63 }
  0x4f   : > { %760 = vmatpush.xpose.msra.mxu3 %v1957_v51  ;;  %v2173_v6 = vadd.f32 %v438_v15, %v373_v16  ;;  %v2207_v15 = vand.u32 4294901760, %v2074_v60 }
  0x50   : > { %712 = vmatpush.xpose.msra.mxu2 %v1984_v5  ;;  %508 = vst [vmem:[%s1898_s6 + $0xd8] sm:$0xff] %v2106_v21  ;;  %v652_v13 = vand.u32 4294901760, %v651_v45  ;;  %v403_v45 = vld [vmem:[%s1871_s10 + $0x98] sm:$0xff] }
  0x51   : > { %502 = vst [vmem:[%s1898_s6 + $0xa8] sm:$0xff] %v2173_v6  ;;  %v2238_v25 = vsub.f32 %v2074_v60, %v2207_v15 }
  0x52   : > { %566 = vmatpush.xpose.msra.mxu0 %v1981_v4  ;;  %623 = vmatpush.xpose.msra.mxu1 %v622_v36  ;;  %v377_v36 = vld [vmem:[%s1863_s18 + $0xc8] sm:$0xff] }
  0x53   : > { %762 = vmatpush.xpose.msra.mxu3 %v1981_v4  ;;  %v2130_v47 = vadd.f32 %v442_v35, %v377_v36  ;;  %v2180_v36 = vand.u32 4294901760, %v2048_v43  ;;  %v2713_v53 = vand.u32 4294901760, %v2238_v25 }
  0x54   : > { %715 = vmatpush.xpose.msra.mxu2 %v2016_v19 }
  0x55   : > { %506 = vst [vmem:[%s1898_s6 + $0xc8] sm:$0xff] %v2130_v47  ;;  %v2212_v16 = vsub.f32 %v2048_v43, %v2180_v36 }
  0x56   : > { %568 = vmatpush.xpose.msra.mxu0 %v2012_v17  ;;  %629 = vmatpush.xpose.msra.mxu1 %v628_v50  ;;  %v407_v50 = vld [vmem:[%s1871_s10 + $0xb8] sm:$0xff] }
  0x57   : > { %764 = vmatpush.xpose.msra.mxu3 %v2012_v17  ;;  %v440_v54 = vmul.f32 %v1879_v2, %v407_v50  ;;  %v436_v50 = vmul.f32 %v1879_v2, %v403_v45  ;;  %v401_v45 = vld [vmem:[%s1871_s10 + $0x88] sm:$0xff]  ;;  %v2708_v48 = vand.u32 4294901760, %v2212_v16 }
  0x58   : > { %718 = vmatpush.xpose.msra.mxu2 %v2040_v30 }
  0x59   : > { %v2152_v62 = vadd.f32 %v440_v54, %v375_v56  ;;  %v2194_v54 = vsub.f32 %v2061_v55, %v2169_v14  ;;  %v2197_v56 = vand.u32 4294901760, %v2088_v1 }
  0x5a   : > { %570 = vmatpush.xpose.msra.mxu0 %v2045_v38  ;;  %635 = vmatpush.xpose.msra.mxu1 %v634_v3  ;;  %v2700_v3 = vand.u32 4294901760, %v2139_v49 }
  0x5b   : > { %766 = vmatpush.xpose.msra.mxu3 %v2045_v38  ;;  %504 = vst [vmem:[%s1898_s6 + $0xb8] sm:$0xff] %v2152_v62  ;;  %v2226_v43 = vsub.f32 %v2088_v1, %v2197_v56  ;;  %v399_v1 = vld [vmem:[%s1871_s10 + $0x78] sm:$0xff] }
  0x5c   : > { %721 = vmatpush.xpose.msra.mxu2 %v2072_v59  ;;  %v663_v35 = vsub.f32 %v2139_v49, %v2700_v3 }
  0x5e   : > { %572 = vmatpush.xpose.msra.mxu0 %v2068_v58  ;;  %641 = vmatpush.xpose.msra.mxu1 %v640_v20  ;;  %v2699_v20 = vand.u32 4294901760, %v2150_v61  ;;  %v664_v10 = vand.u32 4294901760, %v663_v35  ;;  %v2706_v35 = vand.u32 4294901760, %v2194_v54 }
  0x5f   : > { %768 = vmatpush.xpose.msra.mxu3 %v2068_v58 }
  0x60   : > { %724 = vmatpush.xpose.msra.mxu2 %v2097_v9  ;;  %v938_v60 = vsub.f32 %v2194_v54, %v2706_v35  ;;  %v397_v35 = vld [vmem:[%s1871_s10 + $0x68] sm:$0xff] }
  0x62   : > { %574 = vmatpush.xpose.msra.mxu0 %v2092_v7  ;;  %647 = vmatpush.xpose.msra.mxu1 %v646_v12  ;;  %v2184_v12 = vsub.f32 %v2027_v24, %v2159_v0  ;;  %v371_v24 = vld [vmem:[%s1863_s18 + $0x98] sm:$0xff] }
  0x63   : > { %770 = vmatpush.xpose.msra.mxu3 %v2092_v7  ;;  %v2203_v63 = vadd.f32 %v436_v50, %v371_v24  ;;  %v2217_v50 = vand.u32 4294901760, %v2106_v21  ;;  %v369_v24 = vld [vmem:[%s1863_s18 + $0x88] sm:$0xff] }
  0x64   : > { %727 = vmatpush.xpose.msra.mxu2 %v2118_v28  ;;  %v2703_v55 = vand.u32 4294901760, %v2184_v12 }
  0x65   : > { %500 = vst [vmem:[%s1898_s6 + $0x98] sm:$0xff] %v2203_v63  ;;  %v2327_v33 = vand.u32 4294901760, %v2203_v63 }
  0x66   : > { %576 = vmatpush.xpose.msra.mxu0 %v2113_v23  ;;  %653 = vmatpush.xpose.msra.mxu1 %v652_v13  ;;  %v669_v13 = vsub.f32 %v2150_v61, %v2699_v20 }
  0x67   : > { %772 = vmatpush.xpose.msra.mxu3 %v2113_v23 }
  0x68   : > { %730 = vmatpush.xpose.msra.mxu2 %v2139_v49  ;;  %v670_v3 = vand.u32 4294901760, %v669_v13  ;;  %v432_v13 = vmul.f32 %v1879_v2, %v399_v1  ;;  %v681_v1 = vsub.f32 %v2212_v16, %v2708_v48  ;;  %v2280_v48 = vand.u32 4294901760, %v2152_v62 }
  0x6a   : > { %578 = vmatpush.xpose.msra.mxu0 %v2128_v46  ;;  %659 = vmatpush.xpose.msra.mxu1 %v658_v29  ;;  %v434_v29 = vmul.f32 %v1879_v2, %v401_v45  ;;  %v675_v45 = vsub.f32 %v2184_v12, %v2703_v55  ;;  %v367_v55 = vld [vmem:[%s1863_s18 + $0x78] sm:$0xff]  ;;  %v2303_v31 = vsub.f32 %v2152_v62, %v2280_v48 }
  0x6b   : > { %774 = vmatpush.xpose.msra.mxu3 %v2128_v46  ;;  %v2258_v8 = vadd.f32 %v432_v13, %v367_v55  ;;  %v430_v55 = vmul.f32 %v1879_v2, %v397_v35  ;;  %v682_v35 = vand.u32 4294901760, %v681_v1 }
  0x6c   : > { %733 = vmatpush.xpose.msra.mxu2 %v2150_v61  ;;  %v2229_v20 = vadd.f32 %v434_v29, %v369_v24  ;;  %v2244_v29 = vsub.f32 %v2106_v21, %v2217_v50  ;;  %v2255_v24 = vand.u32 4294901760, %v2130_v47  ;;  %v676_v21 = vand.u32 4294901760, %v675_v45 }
  0x6d   : > { %496 = vst [vmem:[%s1898_s6 + $0x78] sm:$0xff] %v2258_v8  ;;  %v2283_v11 = vadd.f32 %v430_v55, %v365_v18  ;;  %v363_v55 = vld [vmem:[%s1863_s18 + $0x58] sm:$0xff] }
  0x6e   : > { %580 = vmatpush.xpose.msra.mxu0 %v2159_v0  ;;  %665 = vmatpush.xpose.msra.mxu1 %v664_v10  ;;  %498 = vst [vmem:[%s1898_s6 + $0x88] sm:$0xff] %v2229_v20  ;;  %v2711_v10 = vand.u32 4294901760, %v2226_v43  ;;  %v2712_v39 = vand.u32 4294901760, %v2244_v29  ;;  %v2277_v13 = vsub.f32 %v2130_v47, %v2255_v24 }
  0x6f   : > { %776 = vmatpush.xpose.msra.mxu3 %v2159_v0  ;;  %494 = vst [vmem:[%s1898_s6 + $0x68] sm:$0xff] %v2283_v11 }
  0x70   : > { %736 = vmatpush.xpose.msra.mxu2 %v2184_v12  ;;  %v944_v45 = vsub.f32 %v2226_v43, %v2711_v10  ;;  %v395_v10 = vld [vmem:[%s1871_s10 + $0x58] sm:$0xff]  ;;  %v950_v18 = vsub.f32 %v2244_v29, %v2712_v39  ;;  %v955_v1 = vand.u32 4294901760, %v2277_v13 }
  0x71   : > { %v428_v47 = vmul.f32 %v1879_v2, %v395_v10 }
  0x72   : > { %582 = vmatpush.xpose.msra.mxu0 %v2180_v36  ;;  %671 = vmatpush.xpose.msra.mxu1 %v670_v3  ;;  %v939_v3 = vand.u32 4294901760, %v938_v60  ;;  %v687_v60 = vsub.f32 %v2238_v25, %v2713_v53  ;;  %v956_v53 = vsub.f32 %v2277_v13, %v955_v1 }
  0x73   : > { %778 = vmatpush.xpose.msra.mxu3 %v2180_v36  ;;  %v2310_v39 = vadd.f32 %v428_v47, %v363_v55  ;;  %v2717_v47 = vand.u32 4294901760, %v2303_v31 }
  0x74   : > { %739 = vmatpush.xpose.msra.mxu2 %v2212_v16  ;;  %v688_v10 = vand.u32 4294901760, %v687_v60  ;;  %v957_v55 = vand.u32 4294901760, %v956_v53 }
  0x75   : > { %492 = vst [vmem:[%s1898_s6 + $0x58] sm:$0xff] %v2310_v39 }
  0x76   : > { %584 = vmatpush.xpose.msra.mxu0 %v2207_v15  ;;  %677 = vmatpush.xpose.msra.mxu1 %v676_v21  ;;  %v945_v21 = vand.u32 4294901760, %v944_v45  ;;  %v951_v45 = vand.u32 4294901760, %v950_v18  ;;  %v391_v18 = vld [vmem:[%s1871_s10 + $0x38] sm:$0xff] }
  0x77   : > { %780 = vmatpush.xpose.msra.mxu3 %v2207_v15 }
  0x78   : > { %742 = vmatpush.xpose.msra.mxu2 %v2238_v25 }
  0x7a   : > { %791 = vmatpush.xpose.msrb.mxu0 %v596_v37  ;;  %v2306_v37 = vand.u32 4294901760, %v2173_v6  ;;  %683 = vmatpush.xpose.msra.mxu1 %v682_v35 }
  0x7b   : > { %940 = vmatpush.xpose.msrb.mxu3 %v939_v3  ;;  %v393_v3 = vld [vmem:[%s1871_s10 + $0x48] sm:$0xff] }
  0x7c   : > { %895 = vmatpush.xpose.msrb.mxu2 %v2169_v14  ;;  %v426_v62 = vmul.f32 %v1879_v2, %v393_v3  ;;  %v2324_v35 = vsub.f32 %v2173_v6, %v2306_v37  ;;  %v2338_v6 = vand.u32 4294901760, %v2229_v20 }
  0x7e   : > { %795 = vmatpush.xpose.msrb.mxu0 %v602_v40  ;;  %v361_v40 = vld [vmem:[%s1863_s18 + $0x48] sm:$0xff]  ;;  %689 = vmatpush.xpose.msra.mxu1 %v688_v10  ;;  %v962_v10 = vsub.f32 %v2303_v31, %v2717_v47  ;;  %v2715_v3 = vand.u32 4294901760, %v2324_v35  ;;  %v2361_v53 = vsub.f32 %v2229_v20, %v2338_v6 }
  0x7f   : > { %946 = vmatpush.xpose.msrb.mxu3 %v945_v21  ;;  %v2331_v60 = vadd.f32 %v426_v62, %v361_v40  ;;  %v424_v21 = vmul.f32 %v1879_v2, %v391_v18  ;;  %v389_v62 = vld [vmem:[%s1871_s10 + $0x28] sm:$0xff]  ;;  %v387_v18 = vld [vmem:[%s1871_s10 + $0x18] sm:$0xff] }
  0x80   : > { %897 = vmatpush.xpose.msrb.mxu2 %v2197_v56  ;;  %v963_v40 = vand.u32 4294901760, %v962_v10  ;;  %v968_v42 = vsub.f32 %v2324_v35, %v2715_v3 }
  0x81   : > { %490 = vst [vmem:[%s1898_s6 + $0x48] sm:$0xff] %v2331_v60 }
  0x82   : > { %799 = vmatpush.xpose.msrb.mxu0 %v608_v44  ;;  %858 = vmatpush.xpose.msrb.mxu1 %v1901_v22  ;;  %v2349_v22 = vsub.f32 %v2203_v63, %v2327_v33  ;;  %v2353_v44 = vadd.f32 %v424_v21, %v359_v34  ;;  %v2364_v63 = vand.u32 4294901760, %v2258_v8  ;;  %v2726_v21 = vand.u32 4294901760, %v1960_v52 }
  0x83   : > { %952 = vmatpush.xpose.msrb.mxu3 %v951_v45  ;;  %v422_v45 = vmul.f32 %v1879_v2, %v389_v62  ;;  %v420_v34 = vmul.f32 %v1879_v2, %v387_v18  ;;  %v969_v62 = vand.u32 4294901760, %v968_v42  ;;  %v2727_v42 = vand.u32 4294901760, %v1984_v5 }
  0x84   : > { %899 = vmatpush.xpose.msrb.mxu2 %v2217_v50  ;;  %488 = vst [vmem:[%s1898_s6 + $0x38] sm:$0xff] %v2353_v44  ;;  %v2384_v10 = vsub.f32 %v2258_v8, %v2364_v63  ;;  %v2420_v5 = vand.u32 4294901760, %v2310_v39 }
  0x86   : > { %803 = vmatpush.xpose.msrb.mxu0 %v614_v57  ;;  %860 = vmatpush.xpose.msrb.mxu1 %v1906_v26  ;;  %v2714_v26 = vand.u32 4294901760, %v2349_v22  ;;  %v357_v57 = vld [vmem:[%s1863_s18 + $0x28] sm:$0xff] }
  0x87   : > { %958 = vmatpush.xpose.msrb.mxu3 %v957_v55  ;;  %v2375_v20 = vadd.f32 %v422_v45, %v357_v57  ;;  %v2716_v55 = vand.u32 4294901760, %v2361_v53  ;;  %v2393_v45 = vand.u32 4294901760, %v2283_v11  ;;  %v519_v57 = vld [vmem:[%s2693_s1] sm:$0xff] }
  0x88   : > { %901 = vmatpush.xpose.msrb.mxu2 %v2255_v24  ;;  %v974_v52 = vsub.f32 %v2349_v22, %v2714_v26  ;;  %v2402_v18 = vand.u32 4294901760, %v519_v57  ;;  %v985_v26 = vand.u32 4294901760, %v2384_v10 }
  0x89   : > { %486 = vst [vmem:[%s1898_s6 + $0x28] sm:$0xff] %v2375_v20  ;;  %v2417_v3 = vsub.f32 %v2283_v11, %v2393_v45 }
  0x8a   : > { %807 = vmatpush.xpose.msrb.mxu0 %v2726_v21  ;;  %862 = vmatpush.xpose.msrb.mxu1 %v1908_v27  ;;  %v355_v27 = vld [vmem:[%s1863_s18 + $0x18] sm:$0xff]  ;;  %v980_v21 = vsub.f32 %v2361_v53, %v2716_v55 }
  0x8b   : > { %964 = vmatpush.xpose.msrb.mxu3 %v963_v40  ;;  %v2397_v8 = vadd.f32 %v420_v34, %v355_v27  ;;  %v385_v40 = vld [vmem:[%s1871_s10 + $0x8] sm:$0xff]  ;;  %v975_v27 = vand.u32 4294901760, %v974_v52  ;;  %691 = vmatmul.f32.vlgmr.msra.gmra.mxu1 %v2402_v18  ;;  %v991_v52 = vand.u32 4294901760, %v2417_v3 }
  0x8c   : > { %903 = vmatpush.xpose.msrb.mxu2 %v2280_v48  ;;  %v418_v34 = vmul.f32 %v1879_v2, %v385_v40  ;;  %v2728_v2 = vand.u32 4294901760, %v2016_v19  ;;  %v981_v11 = vand.u32 4294901760, %v980_v21  ;;  %v2439_v40 = vand.u32 4294901760, %v2331_v60 }
  0x8d   : > { %484 = vst [vmem:[%s1898_s6 + $0x18] sm:$0xff] %v2397_v8  ;;  %v2729_v21 = vand.u32 4294901760, %v2040_v30 }
  0x8e   : > { %811 = vmatpush.xpose.msrb.mxu0 %v2727_v42  ;;  %864 = vmatpush.xpose.msrb.mxu1 %v1918_v32  ;;  %v586_v32 = vsub.f32 %v519_v57, %v2402_v18  ;;  %v353_v42 = vld [vmem:[%s1863_s18 + $0x8] sm:$0xff]  ;;  %v2436_v57 = vsub.f32 %v2310_v39, %v2420_v5  ;;  %v992_v39 = vsub.f32 %v2417_v3, %v991_v52  ;;  %s1625_s18 = scalar_lea.hbm %s1624_s12, 256 }
  0x8f   : > { %970 = vmatpush.xpose.msrb.mxu3 %v969_v62  ;;  %v450_v55 = vadd.f32 %v418_v34, %v353_v42  ;;  %v986_v62 = vsub.f32 %v2384_v10, %v985_v26  ;;  %v2446_v34 = vand.u32 4294901760, %v2353_v44  ;;  %p1626_p4 = scmp.ne.s32.totalorder %s1624_s12, %s1625_s18  ;;  %p1631_p8 = scmp.lt.s32.totalorder %s1629_s11, %s1625_s18 }
  0x90   : > { %905 = vmatpush.xpose.msrb.mxu2 %v2306_v37  ;;  %v587_v47 = vand.u32 4294901760, %v586_v32  ;;  %v993_v42 = vand.u32 4294901760, %v992_v39 }
  0x91   : > { %745 = vmatmul.f32.vlgmr.msra.gmra.mxu2 %v586_v32  ;;  %482 = vst [vmem:[%s1898_s6 + $0x8] sm:$0xff] %v450_v55  ;;  %v2462_v30 = vsub.f32 %v2353_v44, %v2446_v34  ;;  %v2498_v39 = vand.u32 4294901760, %v450_v55  ;;  %p1627_p5 = pnand %p1626_p4, %p1817_p9  ;;  %p1632_p10 = por %p1631_p8, %p1630_p7 }
  0x92   : > { %815 = vmatpush.xpose.msrb.mxu0 %v2728_v2  ;;  %866 = vmatpush.xpose.msrb.mxu1 %v1933_v41  ;;  %v588_v19 = vsub.f32 %v586_v32, %v587_v47  ;;  %v997_v32 = vand.u32 4294901760, %v2436_v57 }
  0x93   : > { %976 = vmatpush.xpose.msrb.mxu3 %v975_v27  ;;  %v987_v27 = vand.u32 4294901760, %v986_v62  ;;  %p1628_p6 = pneg %p1627_p5 }
  0x94   : > { %907 = vmatpush.xpose.msrb.mxu2 %v2327_v33  ;;  %784 = vmatmul.f32.vlgmr.msra.gmra.mxu3 %v587_v47  ;;  %v589_v41 = vand.u32 4294901760, %v588_v19  ;;  %v2454_v47 = vsub.f32 %v2331_v60, %v2439_v40  ;;  %v998_v2 = vsub.f32 %v2436_v57, %v997_v32 }
  0x95   : > { %p1633_p13 = pnand %p1632_p10, %p1628_p6 }
  0x96   : > { %819 = vmatpush.xpose.msrb.mxu0 %v2729_v21  ;;  %868 = vmatpush.xpose.msrb.mxu1 %v1957_v51  ;;  %v2730_v51 = vand.u32 4294901760, %v2072_v59  ;;  %v1003_v60 = vand.u32 4294901760, %v2454_v47  ;;  %v2731_v59 = vand.u32 4294901760, %v2097_v9  ;;  %v999_v44 = vand.u32 4294901760, %v998_v2 }
  0x97   : > { %982 = vmatpush.xpose.msrb.mxu3 %v981_v11  ;;  %590 = vmatmul.f32.vlgmr.msra.gmra.mxu0 %v589_v41  ;;  %v2469_v11 = vand.u32 4294901760, %v2375_v20  ;;  %v2484_v41 = vand.u32 4294901760, %v2397_v8  ;;  %v2732_v9 = vand.u32 4294901760, %v2118_v28  ;;  %v2733_v28 = vand.u32 4294901760, %v2139_v49 }
  0x98   : > { %909 = vmatpush.xpose.msrb.mxu2 %v2338_v6  ;;  %v1004_v62 = vsub.f32 %v2454_v47, %v1003_v60  ;;  %v2512_v2 = vsub.f32 %v450_v55, %v2498_v39  ;;  %v2734_v49 = vand.u32 4294901760, %v2150_v61 }
  0x99   : > { %v2481_v19 = vsub.f32 %v2375_v20, %v2469_v11  ;;  %v2496_v20 = vsub.f32 %v2397_v8, %v2484_v41 }
  0x9a   : > { %823 = vmatpush.xpose.msrb.mxu0 %v2730_v51  ;;  %870 = vmatpush.xpose.msrb.mxu1 %v1981_v4  ;;  %v1009_v4 = vand.u32 4294901760, %v2462_v30  ;;  %v1005_v21 = vand.u32 4294901760, %v1004_v62  ;;  %v1027_v62 = vand.u32 4294901760, %v2512_v2 }
  0x9b   : > { %988 = vmatpush.xpose.msrb.mxu3 %v987_v27  ;;  %v1015_v27 = vand.u32 4294901760, %v2481_v19 }
  0x9c   : > { %911 = vmatpush.xpose.msrb.mxu2 %v2364_v63  ;;  %v1028_v61 = vsub.f32 %v2512_v2, %v1027_v62 }
  0x9d   : > { %v1016_v8 = vsub.f32 %v2481_v19, %v1015_v27 }
  0x9e   : > { %827 = vmatpush.xpose.msrb.mxu0 %v2731_v59  ;;  %872 = vmatpush.xpose.msrb.mxu1 %v2012_v17  ;;  %v1010_v17 = vsub.f32 %v2462_v30, %v1009_v4 }
  0x9f   : > { %994 = vmatpush.xpose.msrb.mxu3 %v993_v42  ;;  %v1021_v42 = vand.u32 4294901760, %v2496_v20 }
  0xa0   : > { %913 = vmatpush.xpose.msrb.mxu2 %v2393_v45  ;;  %v1011_v51 = vand.u32 4294901760, %v1010_v17 }
  0xa2   : > { %831 = vmatpush.xpose.msrb.mxu0 %v2732_v9  ;;  %874 = vmatpush.xpose.msrb.mxu1 %v2045_v38  ;;  %v520_v38 = vld [vmem:[%s2693_s1 + $0x8] sm:$0xff]  ;;  %v2735_v9 = vand.u32 4294901760, %v2184_v12  ;;  %v1029_v12 = vand.u32 4294901760, %v1028_v61 }
  0xa3   : > { %1000 = vmatpush.xpose.msrb.mxu3 %v999_v44  ;;  %v2514_v59 = vand.u32 4294901760, %v520_v38  ;;  %v1022_v44 = vsub.f32 %v2496_v20, %v1021_v42 }
  0xa4   : > { %915 = vmatpush.xpose.msrb.mxu2 %v2420_v5 }
  0xa5   : > { %v2525_v55 = vsub.f32 %v520_v38, %v2514_v59  ;;  %v2737_v38 = vand.u32 4294901760, %v2238_v25  ;;  %v2739_v25 = vand.u32 4294901760, %v2226_v43 }
  0xa6   : > { %835 = vmatpush.xpose.msrb.mxu0 %v2733_v28  ;;  %876 = vmatpush.xpose.msrb.mxu1 %v2068_v58  ;;  %v1017_v58 = vand.u32 4294901760, %v1016_v8 }
  0xa7   : > { %1006 = vmatpush.xpose.msrb.mxu3 %v1005_v21  ;;  %v928_v17 = vand.u32 4294901760, %v2525_v55  ;;  %v2736_v21 = vand.u32 4294901760, %v2212_v16 }
  0xa8   : > { %917 = vmatpush.xpose.msrb.mxu2 %v2439_v40 }
  0xaa   : > { %839 = vmatpush.xpose.msrb.mxu0 %v2734_v49  ;;  %878 = vmatpush.xpose.msrb.mxu1 %v2092_v7  ;;  %v1023_v7 = vand.u32 4294901760, %v1022_v44 }
  0xab   : > { %1012 = vmatpush.xpose.msrb.mxu3 %v1011_v51 }
  0xac   : > { %919 = vmatpush.xpose.msrb.mxu2 %v2446_v34 }
  0xae   : > { %843 = vmatpush.xpose.msrb.mxu0 %v2735_v9  ;;  %880 = vmatpush.xpose.msrb.mxu1 %v2113_v23  ;;  %v929_v23 = vsub.f32 %v2525_v55, %v928_v17 }
  0xaf   : > { %1018 = vmatpush.xpose.msrb.mxu3 %v1017_v58 }
  0xb0   : > { %921 = vmatpush.xpose.msrb.mxu2 %v2469_v11  ;;  %v930_v16 = vand.u32 4294901760, %v929_v23 }
  0xb2   : > { %847 = vmatpush.xpose.msrb.mxu0 %v2736_v21  ;;  %882 = vmatpush.xpose.msrb.mxu1 %v2128_v46  ;;  %v2738_v46 = vand.u32 4294901760, %v2194_v54 }
  0xb3   : > { %1024 = vmatpush.xpose.msrb.mxu3 %v1023_v7 }
  0xb4   : > { %923 = vmatpush.xpose.msrb.mxu2 %v2484_v41 }
  0xb6   : > { %851 = vmatpush.xpose.msrb.mxu0 %v2737_v38  ;;  %884 = vmatpush.xpose.msrb.mxu1 %v2159_v0  ;;  %v2740_v0 = vand.u32 4294901760, %v2244_v29 }
  0xb7   : > { %1030 = vmatpush.xpose.msrb.mxu3 %v1029_v12 }
  0xb8   : > { %925 = vmatpush.xpose.msrb.mxu2 %v2498_v39 }
  0xb9   : > { %853 = vmatmul.f32.vlgmr.msrb.gmra.mxu0 %v2402_v18 }
  0xba   : > { %1038 = vmatpush.xpose.msra.mxu0 %v2194_v54  ;;  %886 = vmatpush.xpose.msrb.mxu1 %v2180_v36  ;;  %v2742_v36 = vand.u32 4294901760, %v2324_v35  ;;  %v2743_v54 = vand.u32 4294901760, %v2349_v22 }
  0xbb   : > { %1199 = vmatpush.xpose.msra.mxu3 %v2169_v14  ;;  %931 = vmatmul.f32.vlgmr.msrb.gmra.mxu2 %v930_v16 }
  0xbc   : > { %1132 = vmatpush.xpose.msra.mxu2 %v2738_v46  ;;  %1032 = vmatmul.f32.vlgmr.msrb.gmra.mxu3 %v2514_v59 }
  0xbe   : > { %1041 = vmatpush.xpose.msra.mxu0 %v2226_v43  ;;  %888 = vmatpush.xpose.msrb.mxu1 %v2207_v15 }
  0xbf   : > { %1201 = vmatpush.xpose.msra.mxu3 %v2197_v56 }
  0xc0   : > { %1136 = vmatpush.xpose.msra.mxu2 %v2739_v25 }
  0xc1   : > { %890 = vmatmul.f32.vlgmr.msrb.gmra.mxu1 %v2402_v18 }
  0xc2   : > { %1044 = vmatpush.xpose.msra.mxu0 %v2244_v29  ;;  %1091 = vmatpush.xpose.msra.mxu1 %v2169_v14  ;;  %v2741_v14 = vand.u32 4294901760, %v2303_v31 }
  0xc3   : > { %1203 = vmatpush.xpose.msra.mxu3 %v2217_v50 }
  0xc4   : > { %1140 = vmatpush.xpose.msra.mxu2 %v2740_v0 }
  0xc6   : > { %1047 = vmatpush.xpose.msra.mxu0 %v2277_v13  ;;  %1093 = vmatpush.xpose.msra.mxu1 %v2197_v56  ;;  %v2744_v56 = vand.u32 4294901760, %v2361_v53 }
  0xc7   : > { %1205 = vmatpush.xpose.msra.mxu3 %v2255_v24 }
  0xc8   : > { %1144 = vmatpush.xpose.msra.mxu2 %v955_v1 }
  0xca   : > { %1050 = vmatpush.xpose.msra.mxu0 %v2303_v31  ;;  %1095 = vmatpush.xpose.msra.mxu1 %v2217_v50 }
  0xcb   : > { %1207 = vmatpush.xpose.msra.mxu3 %v2280_v48 }
  0xcc   : > { %1148 = vmatpush.xpose.msra.mxu2 %v2741_v14 }
  0xce   : > { %1053 = vmatpush.xpose.msra.mxu0 %v2324_v35  ;;  %1097 = vmatpush.xpose.msra.mxu1 %v2255_v24 }
  0xcf   : > { %1209 = vmatpush.xpose.msra.mxu3 %v2306_v37 }
  0xd0   : > { %1152 = vmatpush.xpose.msra.mxu2 %v2742_v36 }
  0xd2   : > { %1056 = vmatpush.xpose.msra.mxu0 %v2349_v22  ;;  %1099 = vmatpush.xpose.msra.mxu1 %v2280_v48 }
  0xd3   : > { %1211 = vmatpush.xpose.msra.mxu3 %v2327_v33 }
  0xd4   : > { %1156 = vmatpush.xpose.msra.mxu2 %v2743_v54 }
  0xd6   : > { %1059 = vmatpush.xpose.msra.mxu0 %v2361_v53  ;;  %1101 = vmatpush.xpose.msra.mxu1 %v2306_v37 }
  0xd7   : > { %1213 = vmatpush.xpose.msra.mxu3 %v2338_v6 }
  0xd8   : > { %1160 = vmatpush.xpose.msra.mxu2 %v2744_v56 }
  0xda   : > { %1062 = vmatpush.xpose.msra.mxu0 %v2384_v10  ;;  %1103 = vmatpush.xpose.msra.mxu1 %v2327_v33 }
  0xdb   : > { %1215 = vmatpush.xpose.msra.mxu3 %v2364_v63 }
  0xdc   : > { %1164 = vmatpush.xpose.msra.mxu2 %v985_v26 }
  0xde   : > { %1065 = vmatpush.xpose.msra.mxu0 %v2417_v3  ;;  %1105 = vmatpush.xpose.msra.mxu1 %v2338_v6 }
  0xdf   : > { %1217 = vmatpush.xpose.msra.mxu3 %v2393_v45 }
  0xe0   : > { %1168 = vmatpush.xpose.msra.mxu2 %v991_v52 }
  0xe2   : > { %1068 = vmatpush.xpose.msra.mxu0 %v2436_v57  ;;  %1107 = vmatpush.xpose.msra.mxu1 %v2364_v63 }
  0xe3   : > { %1219 = vmatpush.xpose.msra.mxu3 %v2420_v5 }
  0xe4   : > { %1172 = vmatpush.xpose.msra.mxu2 %v997_v32 }
  0xe6   : > { %1071 = vmatpush.xpose.msra.mxu0 %v2454_v47  ;;  %1109 = vmatpush.xpose.msra.mxu1 %v2393_v45 }
  0xe7   : > { %1221 = vmatpush.xpose.msra.mxu3 %v2439_v40 }
  0xe8   : > { %1176 = vmatpush.xpose.msra.mxu2 %v1003_v60 }
  0xea   : > { %1074 = vmatpush.xpose.msra.mxu0 %v2462_v30  ;;  %1111 = vmatpush.xpose.msra.mxu1 %v2420_v5 }
  0xeb   : > { %1223 = vmatpush.xpose.msra.mxu3 %v2446_v34 }
  0xec   : > { %1180 = vmatpush.xpose.msra.mxu2 %v1009_v4 }
  0xee   : > { %1077 = vmatpush.xpose.msra.mxu0 %v2481_v19  ;;  %1113 = vmatpush.xpose.msra.mxu1 %v2439_v40 }
  0xef   : > { %1225 = vmatpush.xpose.msra.mxu3 %v2469_v11 }
  0xf0   : > { %1184 = vmatpush.xpose.msra.mxu2 %v1015_v27 }
  0xf2   : > { %1080 = vmatpush.xpose.msra.mxu0 %v2496_v20  ;;  %1115 = vmatpush.xpose.msra.mxu1 %v2446_v34 }
  0xf3   : > { %1227 = vmatpush.xpose.msra.mxu3 %v2484_v41 }
  0xf4   : > { %1188 = vmatpush.xpose.msra.mxu2 %v1021_v42 }
  0xf6   : > { %1083 = vmatpush.xpose.msra.mxu0 %v2512_v2  ;;  %1117 = vmatpush.xpose.msra.mxu1 %v2469_v11 }
  0xf7   : > { %1229 = vmatpush.xpose.msra.mxu3 %v2498_v39 }
  0xf8   : > { %1192 = vmatpush.xpose.msra.mxu2 %v1027_v62 }
  0xf9   : > { %1086 = vmatmul.f32.vlgmr.msra.gmra.mxu0 %v2525_v55 }
  0xfa   : > { %1119 = vmatpush.xpose.msra.mxu1 %v2484_v41  ;;  %1231 = vmatmul.f32.vlgmr.msra.gmra.mxu3 %v2514_v59 }
  0xfb   : > { %1194 = vmatmul.f32.vlgmr.msra.gmra.mxu2 %v2514_v59 }
  0xfe   : > { %1121 = vmatpush.xpose.msra.mxu1 %v2498_v39 }
 0x101   : > { %1125 = vmatmul.f32.vlgmr.msra.gmra.mxu1 %v928_v17 }
 0x102   : > { %1636 = shalt.err (!%p1633_p13)
}
 0x103   : > { %s1731_s6 = smov 256   ;;  %s1732_s26 = smov 16  }
 0x104   : > { %1478 = dma.vmem_to_hbm [thread:$0]  (%p1817_p9), %s1278_s29, 4096, %s1280_s16, %s1248_s17, %s1731_s6, %s1731_s6, %s1732_s26  }
 0x105   : > { %s1457_s28 = sshll.u32 %s1856_s27, 3  ;;  %s1461_s30 = sshll.u32 %s1719_s23, 3 }
 0x106   : > { %s1258_s15 = scalar_lea.hbm %s2696_s4, %s1461_s30  ;;  %s331_s29 = scalar_lea.vmem [#allocation9], %s1457_s28 }
 0x107   : > { %s1260_s16 = sshll.u32 %s331_s29, 4  ;;  %s1262_s17 = sshll.u32 %s1258_s15, 4  ;;  %s1261_s16 = int_to_ptr.vmem [resolvable:$true] %s1260_s16  ;;  %s1263_s17 = int_to_ptr.hbm [resolvable:$true] %s1262_s17 }
 0x108   : > { %v692_v48 = vpop.f32.mrf.mxu1  ;;  %s1243_s23 = scalar_lea.sflag [#allocation6], %s1856_s27  ;;  %s1651_s12 = sshra.s32 %s1263_s17, 4  ;;  %s1652_s12 = int_to_ptr.hbm [resolvable:$true] %s1651_s12 }
 0x109   : > { %s1653_s18 = scalar_lea.hbm %s1652_s12, 8  ;;  %s1657_s11 = scalar_lea.hbm %s2696_s4, 16 }
 0x10a   : > { %p1654_p0 = scmp.ne.s32.totalorder %s1652_s12, %s1653_s18  ;;  %p1658_p3 = scmp.lt.s32.totalorder %s1652_s12, %s2696_s4 }
 0x10b   : > { %p1659_p4 = scmp.lt.s32.totalorder %s1657_s11, %s1653_s18 }
 0x10c   : > { %p1655_p1 = pnand %p1654_p0, %p1817_p9 }
 0x10d   : > { %p1660_p5 = por %p1659_p4, %p1658_p3 }
 0x10e   : > { %p1656_p2 = pneg %p1655_p1 }
 0x110   : > { %p1661_p6 = pnand %p1660_p5, %p1656_p2 }
 0x114   : > { %v591_v15 = vpop.f32.mrf.mxu0  ;;  %v746_v43 = vpop.f32.mrf.mxu2 }
 0x115   : > { %v693_v50 = vadd.f32 %v692_v48, %v591_v15 }
 0x117   : > { %v747_v29 = vadd.f32 %v746_v43, %v693_v50  ;;  %v785_v24 = vpop.f32.mrf.mxu3 }
 0x119   : > { %v786_v13 = vadd.f32 %v785_v24, %v747_v29 }
 0x136   : > { %v854_v1 = vpop.f32.mrf.mxu0 }
 0x137   : > { %v855_v31 = vadd.f32 %v854_v1, %v786_v13 }
 0x13e   : > { %v891_v37 = vpop.f32.mrf.mxu1  ;;  %v932_v33 = vpop.f32.mrf.mxu2 }
 0x13f   : > { %v892_v35 = vadd.f32 %v891_v37, %v855_v31  ;;  %v1033_v3 = vpop.f32.mrf.mxu3 }
 0x141   : > { %v933_v6 = vadd.f32 %v932_v33, %v892_v35 }
 0x143   : > { %v1034_v53 = vadd.f32 %v1033_v3, %v933_v6 }
 0x176   : > { %v1087_v22 = vpop.f32.mrf.mxu0 }
 0x177   : > { %v1088_v63 = vadd.f32 %v1087_v22, %v1034_v53 }
 0x17d   : > { %v1232_v18 = vpop.f32.mrf.mxu3 }
 0x17e   : > { %v1126_v26 = vpop.f32.mrf.mxu1  ;;  %v1195_v10 = vpop.f32.mrf.mxu2 }
 0x17f   : > { %v1127_v45 = vadd.f32 %v1126_v26, %v1088_v63 }
 0x181   : > { %v1196_v5 = vadd.f32 %v1195_v10, %v1127_v45 }
 0x183   : > { %v1233_v52 = vadd.f32 %v1232_v18, %v1196_v5 }
 0x185   : > { %1241 = vst [vmem:[%s331_s29] sm:$0xff] %v1233_v52 }
 0x186   : > { %1664 = shalt.err (!%p1661_p6)
}
 0x187   : > { %1477 = dma.vmem_to_hbm [thread:$0]  (%p1817_p9), %s1261_s16, 128, %s1263_s17, %s1243_s23  }
 0x188 PF: > { %s1294_s27 = sand.u32 1, %s1707_s20   ;;  %p1489_p7 = pnand %p1445_p12, %p1824_p11 }
 0x189   : > { %s1295_s6 = scalar_lea.sflag [#allocation6], %s1294_s27 }
 0x18a   : > { %p1490_p8 = pneg %p1489_p7 }
 0x18c   : > { %1698 = dma.done.wait (%p1490_p8), %s1295_s6, 128  }
 0x18d   : > { %1700 = vsyncadd (%p1490_p8), %s1295_s6, 4294967168  ;;  %s1305_s26 = scalar_lea.sflag [#allocation11], %s1294_s27 }
 0x18e   : > { %1702 = dma.done.wait (%p1490_p8), %s1305_s26, 4096  }
 0x18f   : > { %1704 = vsyncadd (%p1490_p8), %s1305_s26, 4294963200  ;;  %s29_s25 = sadd.s32 1, %s1727_s25   ;;  %s2745_s7 = sld [smem:[#allocation16_spill]] }
 0x190   : > { %p26_p10 = scmp.ge.s32.totalorder %s29_s25, 4   ;;  %s2746_s20 = smov %s1711_s21 }
 0x191   : > { %s2747_s21 = smov %s1715_s22  ;;  %s2748_s22 = smov %s1822_s8 }
 0x192   : > { %s2749_s23 = smov %s1723_s24  ;;  %28 = sbr.rel (!%p26_p10) target bundleno = 13 (0xd), region = 122 }
 0x195   : > { %s2750_s24 = smov %s2745_s7 }
 0x197   :  { %1311 = vsyncpa [#allocation5], 1 }
 0x198   :  { %1313 = vsyncpa [#allocation5 + $0x1], 1 }
 0x199   :  { %1314 = vsyncpa [#allocation8], 1 }
 0x19a   :  { %1316 = vsyncpa [#allocation8 + $0x1], 1 }
 0x19b   :  { %1317 = vsyncpa [#allocation6], 1 }
 0x19c   :  { %1319 = vsyncpa [#allocation6 + $0x1], 1 }
 0x19d   :  { %1320 = vsyncpa [#allocation11], 1 }
 0x19e   :  { %1322 = vsyncpa [#allocation11 + $0x1], 1 }

</bundles_post_ra>
